<compile_context>
chip_gen: v7x
topology: tpu7x:2x2x1
jax: 0.10.0
libtpu: 0.0.40
codegen_flags: <defaults>
</compile_context>

<pallas_src>
import functools

import jax
import jax.numpy as jnp
from jax.experimental import pallas as pl
from jax.experimental.pallas import tpu as pltpu


def cross_attention_kernel(x_ref, m_ref, wq_ref, wk_ref, wv_ref, wo_ref, bo_ref,
                           o_ref, *, heads, dim_head, scale):
    B, n, dim = x_ref.shape
    nm = m_ref.shape[1]

    # ---- fused, lane-dense projections -------------------------------------
    # Merge (batch, seq) along the major axes only (no lane movement) so each
    # projection is ONE (B*n, dim) x (dim, inner) MXU matmul.
    xf = x_ref[...].reshape(B * n, dim) * scale      # softmax scale folded into q path
    mf = m_ref[...].reshape(B * nm, dim)

    q = jnp.dot(xf, wq_ref[...], preferred_element_type=jnp.float32)   # (B*n, inner)
    k = jnp.dot(mf, wk_ref[...], preferred_element_type=jnp.float32)   # (B*nm, inner)
    v = jnp.dot(mf, wv_ref[...], preferred_element_type=jnp.float32)   # (B*nm, inner)

    # ---- attention core: batched over B, static loop over heads -------------
    out_heads = []
    for h in range(heads):                           # heads is small; static unroll
        sl = slice(h * dim_head, (h + 1) * dim_head)
        qh = q[:, sl].reshape(B, n, dim_head)        # leading-axis split only
        kh = k[:, sl].reshape(B, nm, dim_head)
        vh = v[:, sl].reshape(B, nm, dim_head)

        dots = jnp.einsum('bnd,bmd->bnm', qh, kh,
                          preferred_element_type=jnp.float32)          # (B, n, nm)
        dots = dots - jnp.max(dots, axis=-1, keepdims=True)
        e = jnp.exp(dots)                                              # f32 VPU/EUP
        p = e / jnp.sum(e, axis=-1, keepdims=True)                     # exact divide
        oh = jnp.einsum('bnm,bmd->bnd', p, vh,
                        preferred_element_type=jnp.float32)            # (B, n, dh)
        out_heads.append(oh.reshape(B * n, dim_head))

    # ---- fused output projection --------------------------------------------
    # Heads stay packed along the lane axis -> one (B*n, inner) x (inner, dim)
    # matmul, one lane-dense store.
    out = jnp.concatenate(out_heads, axis=-1)                          # (B*n, inner)
    y = jnp.dot(out, wo_ref[...], preferred_element_type=jnp.float32) + bo_ref[...]
    o_ref[...] = y.reshape(B, n, dim).astype(o_ref.dtype)


def cross_attention(x, m, wq, wk, wv, wo, bo, *, heads, dim_head, dim):
    b, n, _ = x.shape
    scale = float(dim) ** (-0.5)   # NOTE: PyTorch module scales by dim**-0.5

    kernel = functools.partial(cross_attention_kernel,
                               heads=heads, dim_head=dim_head, scale=scale)

    # Whole problem fits VMEM on every generation -> single invocation, no grid.
    # TODO(synk): optional `mask` argument of the PyTorch forward (masked_fill
    # path) is not implemented; this is the mask=None path only.
    return pl.pallas_call(
        kernel,
        out_shape=jax.ShapeDtypeStruct((b, n, dim), x.dtype),
        in_specs=[pl.BlockSpec(memory_space=pltpu.MemorySpace.VMEM)
                  for _ in range(7)],
        out_specs=pl.BlockSpec(memory_space=pltpu.MemorySpace.VMEM),
    )(x, m, wq, wk, wv, wo, bo)


def cross_attention_ref(x, m, wq, wk, wv, wo, bo, *, heads, dim_head, dim):
    """Pure-JAX reference mirroring the PyTorch forward."""
    b, n, _ = x.shape
    scale = float(dim) ** (-0.5)
    q = x @ wq
    k = m @ wk
    v = m @ wv

    def split(t):
        bb, nn, _ = t.shape
        return t.reshape(bb, nn, heads, dim_head).transpose(0, 2, 1, 3)  # b h n d

    q, k, v = split(q), split(k), split(v)
    dots = jnp.einsum('bhid,bhjd->bhij', q, k) * scale
    attn = jax.nn.softmax(dots, axis=-1)
    out = jnp.einsum('bhij,bhjd->bhid', attn, v)
    out = out.transpose(0, 2, 1, 3).reshape(b, n, heads * dim_head)
    return out @ wo + bo


if __name__ == "__main__":
    # Small shapes consistent with the module.
    B, N, NM = 2, 8, 8
    DIM, HEADS, DIM_HEAD = 32, 4, 8
    INNER = HEADS * DIM_HEAD

    key = jax.random.PRNGKey(0)
    kx, km, k1, k2, k3, k4, k5 = jax.random.split(key, 7)

    x = jax.random.normal(kx, (B, N, DIM), dtype=jnp.float32)
    m = jax.random.normal(km, (B, NM, DIM), dtype=jnp.float32)

    # Deterministic synthetic parameters (stored as (in, out) / (inner, out)).
    wq = jax.random.normal(k1, (DIM, INNER), dtype=jnp.float32) * 0.05
    wk = jax.random.normal(k2, (DIM, INNER), dtype=jnp.float32) * 0.05
    wv = jax.random.normal(k3, (DIM, INNER), dtype=jnp.float32) * 0.05
    wo = jax.random.normal(k4, (INNER, DIM), dtype=jnp.float32) * 0.05
    bo = jax.random.normal(k5, (1, DIM), dtype=jnp.float32) * 0.05

    out = cross_attention(x, m, wq, wk, wv, wo, bo,
                          heads=HEADS, dim_head=DIM_HEAD, dim=DIM)
    out = jax.block_until_ready(out)

    ref = cross_attention_ref(x, m, wq, wk, wv, wo, bo,
                              heads=HEADS, dim_head=DIM_HEAD, dim=DIM)
    assert out.shape == (B, N, DIM)
    # All-f32 math with exact softmax divide -> tight tolerance.
    assert jnp.allclose(out, ref, atol=1e-4, rtol=1e-4), "mismatch vs. reference"

    print("KERNEL_OK")
</pallas_src>

<mosaic_0001>
module attributes {stable_mosaic.version = 11 : i64} {
  func.func @cross_attention_kernel(%arg0: memref<2x8x32xf32, #tpu.memory_space<vmem>>, %arg1: memref<2x8x32xf32, #tpu.memory_space<vmem>>, %arg2: memref<32x32xf32, #tpu.memory_space<vmem>>, %arg3: memref<32x32xf32, #tpu.memory_space<vmem>>, %arg4: memref<32x32xf32, #tpu.memory_space<vmem>>, %arg5: memref<32x32xf32, #tpu.memory_space<vmem>>, %arg6: memref<1x32xf32, #tpu.memory_space<vmem>>, %arg7: memref<2x8x32xf32, #tpu.memory_space<vmem>>) attributes {dimension_semantics = [], scalar_prefetch = 0 : i64, scratch_operands = 0 : i64, tpu.core_type = #tpu.core_type<tc>} {
    %c0 = arith.constant 0 : index
    %c0_0 = arith.constant 0 : index
    %c0_1 = arith.constant 0 : index
    %0 = vector.load %arg0[%c0, %c0_0, %c0_1] : memref<2x8x32xf32, #tpu.memory_space<vmem>>, vector<2x8x32xf32>
    %1 = vector.shape_cast %0 : vector<2x8x32xf32> to vector<16x32xf32>
    %cst = arith.constant 0.176776692 : f32
    %2 = vector.broadcast %cst : f32 to vector<16x32xf32>
    %3 = arith.mulf %1, %2 : vector<16x32xf32>
    %c0_2 = arith.constant 0 : index
    %c0_3 = arith.constant 0 : index
    %c0_4 = arith.constant 0 : index
    %4 = vector.load %arg1[%c0_2, %c0_3, %c0_4] : memref<2x8x32xf32, #tpu.memory_space<vmem>>, vector<2x8x32xf32>
    %5 = vector.shape_cast %4 : vector<2x8x32xf32> to vector<16x32xf32>
    %c0_5 = arith.constant 0 : index
    %c0_6 = arith.constant 0 : index
    %6 = vector.load %arg2[%c0_5, %c0_6] : memref<32x32xf32, #tpu.memory_space<vmem>>, vector<32x32xf32>
    %cst_7 = arith.constant dense<0.000000e+00> : vector<16x32xf32>
    %7 = tpu.matmul %3, %6, %cst_7 {dimension_numbers = #tpu.dot_dimension_numbers<[1], [0], [0], [1], [0, 0, 1, 1], [], []>} : vector<16x32xf32>, vector<32x32xf32>, vector<16x32xf32> -> vector<16x32xf32>
    %c0_8 = arith.constant 0 : index
    %c0_9 = arith.constant 0 : index
    %8 = vector.load %arg3[%c0_8, %c0_9] : memref<32x32xf32, #tpu.memory_space<vmem>>, vector<32x32xf32>
    %cst_10 = arith.constant dense<0.000000e+00> : vector<16x32xf32>
    %9 = tpu.matmul %5, %8, %cst_10 {dimension_numbers = #tpu.dot_dimension_numbers<[1], [0], [0], [1], [0, 0, 1, 1], [], []>} : vector<16x32xf32>, vector<32x32xf32>, vector<16x32xf32> -> vector<16x32xf32>
    %c0_11 = arith.constant 0 : index
    %c0_12 = arith.constant 0 : index
    %10 = vector.load %arg4[%c0_11, %c0_12] : memref<32x32xf32, #tpu.memory_space<vmem>>, vector<32x32xf32>
    %cst_13 = arith.constant dense<0.000000e+00> : vector<16x32xf32>
    %11 = tpu.matmul %5, %10, %cst_13 {dimension_numbers = #tpu.dot_dimension_numbers<[1], [0], [0], [1], [0, 0, 1, 1], [], []>} : vector<16x32xf32>, vector<32x32xf32>, vector<16x32xf32> -> vector<16x32xf32>
    %12 = vector.extract_strided_slice %7 {offsets = [0, 0], sizes = [16, 8], strides = [1, 1]} : vector<16x32xf32> to vector<16x8xf32>
    %13 = vector.shape_cast %12 : vector<16x8xf32> to vector<2x8x8xf32>
    %14 = vector.extract_strided_slice %9 {offsets = [0, 0], sizes = [16, 8], strides = [1, 1]} : vector<16x32xf32> to vector<16x8xf32>
    %15 = vector.shape_cast %14 : vector<16x8xf32> to vector<2x8x8xf32>
    %16 = vector.extract_strided_slice %11 {offsets = [0, 0], sizes = [16, 8], strides = [1, 1]} : vector<16x32xf32> to vector<16x8xf32>
    %17 = vector.shape_cast %16 : vector<16x8xf32> to vector<2x8x8xf32>
    "tpu.trace_start"() <{level = 10 : i32, message = "bnd,bmd->bnm"}> : () -> ()
    %cst_14 = arith.constant dense<0.000000e+00> : vector<2x8x8xf32>
    %18 = tpu.matmul %13, %15, %cst_14 {dimension_numbers = #tpu.dot_dimension_numbers<[2], [2], [1], [1], [0, 0, 0, 1, 1, 1], [0], [0]>} : vector<2x8x8xf32>, vector<2x8x8xf32>, vector<2x8x8xf32> -> vector<2x8x8xf32>
    "tpu.trace_stop"() : () -> ()
    %cst_15 = arith.constant dense<0xFF800000> : vector<2x8xf32>
    %19 = vector.multi_reduction <maximumf>, %18, %cst_15 [2] : vector<2x8x8xf32> to vector<2x8xf32>
    %20 = vector.shape_cast %19 : vector<2x8xf32> to vector<2x8x1xf32>
    %21 = vector.broadcast %20 : vector<2x8x1xf32> to vector<2x8x8xf32>
    %22 = arith.subf %18, %21 : vector<2x8x8xf32>
    %23 = math.exp %22 : vector<2x8x8xf32>
    %cst_16 = arith.constant dense<0.000000e+00> : vector<2x8xf32>
    %24 = vector.multi_reduction <add>, %23, %cst_16 [2] : vector<2x8x8xf32> to vector<2x8xf32>
    %25 = vector.shape_cast %24 : vector<2x8xf32> to vector<2x8x1xf32>
    %26 = vector.broadcast %25 : vector<2x8x1xf32> to vector<2x8x8xf32>
    %27 = arith.divf %23, %26 : vector<2x8x8xf32>
    "tpu.trace_start"() <{level = 10 : i32, message = "bnm,bmd->bnd"}> : () -> ()
    %cst_17 = arith.constant dense<0.000000e+00> : vector<2x8x8xf32>
    %28 = tpu.matmul %27, %17, %cst_17 {dimension_numbers = #tpu.dot_dimension_numbers<[2], [1], [1], [2], [0, 0, 0, 1, 1, 2], [0], [0]>} : vector<2x8x8xf32>, vector<2x8x8xf32>, vector<2x8x8xf32> -> vector<2x8x8xf32>
    "tpu.trace_stop"() : () -> ()
    %29 = vector.shape_cast %28 : vector<2x8x8xf32> to vector<16x8xf32>
    %30 = vector.extract_strided_slice %7 {offsets = [0, 8], sizes = [16, 8], strides = [1, 1]} : vector<16x32xf32> to vector<16x8xf32>
    %31 = vector.shape_cast %30 : vector<16x8xf32> to vector<2x8x8xf32>
    %32 = vector.extract_strided_slice %9 {offsets = [0, 8], sizes = [16, 8], strides = [1, 1]} : vector<16x32xf32> to vector<16x8xf32>
    %33 = vector.shape_cast %32 : vector<16x8xf32> to vector<2x8x8xf32>
    %34 = vector.extract_strided_slice %11 {offsets = [0, 8], sizes = [16, 8], strides = [1, 1]} : vector<16x32xf32> to vector<16x8xf32>
    %35 = vector.shape_cast %34 : vector<16x8xf32> to vector<2x8x8xf32>
    "tpu.trace_start"() <{level = 10 : i32, message = "bnd,bmd->bnm"}> : () -> ()
    %cst_18 = arith.constant dense<0.000000e+00> : vector<2x8x8xf32>
    %36 = tpu.matmul %31, %33, %cst_18 {dimension_numbers = #tpu.dot_dimension_numbers<[2], [2], [1], [1], [0, 0, 0, 1, 1, 1], [0], [0]>} : vector<2x8x8xf32>, vector<2x8x8xf32>, vector<2x8x8xf32> -> vector<2x8x8xf32>
    "tpu.trace_stop"() : () -> ()
    %cst_19 = arith.constant dense<0xFF800000> : vector<2x8xf32>
    %37 = vector.multi_reduction <maximumf>, %36, %cst_19 [2] : vector<2x8x8xf32> to vector<2x8xf32>
    %38 = vector.shape_cast %37 : vector<2x8xf32> to vector<2x8x1xf32>
    %39 = vector.broadcast %38 : vector<2x8x1xf32> to vector<2x8x8xf32>
    %40 = arith.subf %36, %39 : vector<2x8x8xf32>
    %41 = math.exp %40 : vector<2x8x8xf32>
    %cst_20 = arith.constant dense<0.000000e+00> : vector<2x8xf32>
    %42 = vector.multi_reduction <add>, %41, %cst_20 [2] : vector<2x8x8xf32> to vector<2x8xf32>
    %43 = vector.shape_cast %42 : vector<2x8xf32> to vector<2x8x1xf32>
    %44 = vector.broadcast %43 : vector<2x8x1xf32> to vector<2x8x8xf32>
    %45 = arith.divf %41, %44 : vector<2x8x8xf32>
    "tpu.trace_start"() <{level = 10 : i32, message = "bnm,bmd->bnd"}> : () -> ()
    %cst_21 = arith.constant dense<0.000000e+00> : vector<2x8x8xf32>
    %46 = tpu.matmul %45, %35, %cst_21 {dimension_numbers = #tpu.dot_dimension_numbers<[2], [1], [1], [2], [0, 0, 0, 1, 1, 2], [0], [0]>} : vector<2x8x8xf32>, vector<2x8x8xf32>, vector<2x8x8xf32> -> vector<2x8x8xf32>
    "tpu.trace_stop"() : () -> ()
    %47 = vector.shape_cast %46 : vector<2x8x8xf32> to vector<16x8xf32>
    %48 = vector.extract_strided_slice %7 {offsets = [0, 16], sizes = [16, 8], strides = [1, 1]} : vector<16x32xf32> to vector<16x8xf32>
    %49 = vector.shape_cast %48 : vector<16x8xf32> to vector<2x8x8xf32>
    %50 = vector.extract_strided_slice %9 {offsets = [0, 16], sizes = [16, 8], strides = [1, 1]} : vector<16x32xf32> to vector<16x8xf32>
    %51 = vector.shape_cast %50 : vector<16x8xf32> to vector<2x8x8xf32>
    %52 = vector.extract_strided_slice %11 {offsets = [0, 16], sizes = [16, 8], strides = [1, 1]} : vector<16x32xf32> to vector<16x8xf32>
    %53 = vector.shape_cast %52 : vector<16x8xf32> to vector<2x8x8xf32>
    "tpu.trace_start"() <{level = 10 : i32, message = "bnd,bmd->bnm"}> : () -> ()
    %cst_22 = arith.constant dense<0.000000e+00> : vector<2x8x8xf32>
    %54 = tpu.matmul %49, %51, %cst_22 {dimension_numbers = #tpu.dot_dimension_numbers<[2], [2], [1], [1], [0, 0, 0, 1, 1, 1], [0], [0]>} : vector<2x8x8xf32>, vector<2x8x8xf32>, vector<2x8x8xf32> -> vector<2x8x8xf32>
    "tpu.trace_stop"() : () -> ()
    %cst_23 = arith.constant dense<0xFF800000> : vector<2x8xf32>
    %55 = vector.multi_reduction <maximumf>, %54, %cst_23 [2] : vector<2x8x8xf32> to vector<2x8xf32>
    %56 = vector.shape_cast %55 : vector<2x8xf32> to vector<2x8x1xf32>
    %57 = vector.broadcast %56 : vector<2x8x1xf32> to vector<2x8x8xf32>
    %58 = arith.subf %54, %57 : vector<2x8x8xf32>
    %59 = math.exp %58 : vector<2x8x8xf32>
    %cst_24 = arith.constant dense<0.000000e+00> : vector<2x8xf32>
    %60 = vector.multi_reduction <add>, %59, %cst_24 [2] : vector<2x8x8xf32> to vector<2x8xf32>
    %61 = vector.shape_cast %60 : vector<2x8xf32> to vector<2x8x1xf32>
    %62 = vector.broadcast %61 : vector<2x8x1xf32> to vector<2x8x8xf32>
    %63 = arith.divf %59, %62 : vector<2x8x8xf32>
    "tpu.trace_start"() <{level = 10 : i32, message = "bnm,bmd->bnd"}> : () -> ()
    %cst_25 = arith.constant dense<0.000000e+00> : vector<2x8x8xf32>
    %64 = tpu.matmul %63, %53, %cst_25 {dimension_numbers = #tpu.dot_dimension_numbers<[2], [1], [1], [2], [0, 0, 0, 1, 1, 2], [0], [0]>} : vector<2x8x8xf32>, vector<2x8x8xf32>, vector<2x8x8xf32> -> vector<2x8x8xf32>
    "tpu.trace_stop"() : () -> ()
    %65 = vector.shape_cast %64 : vector<2x8x8xf32> to vector<16x8xf32>
    %66 = vector.extract_strided_slice %7 {offsets = [0, 24], sizes = [16, 8], strides = [1, 1]} : vector<16x32xf32> to vector<16x8xf32>
    %67 = vector.shape_cast %66 : vector<16x8xf32> to vector<2x8x8xf32>
    %68 = vector.extract_strided_slice %9 {offsets = [0, 24], sizes = [16, 8], strides = [1, 1]} : vector<16x32xf32> to vector<16x8xf32>
    %69 = vector.shape_cast %68 : vector<16x8xf32> to vector<2x8x8xf32>
    %70 = vector.extract_strided_slice %11 {offsets = [0, 24], sizes = [16, 8], strides = [1, 1]} : vector<16x32xf32> to vector<16x8xf32>
    %71 = vector.shape_cast %70 : vector<16x8xf32> to vector<2x8x8xf32>
    "tpu.trace_start"() <{level = 10 : i32, message = "bnd,bmd->bnm"}> : () -> ()
    %cst_26 = arith.constant dense<0.000000e+00> : vector<2x8x8xf32>
    %72 = tpu.matmul %67, %69, %cst_26 {dimension_numbers = #tpu.dot_dimension_numbers<[2], [2], [1], [1], [0, 0, 0, 1, 1, 1], [0], [0]>} : vector<2x8x8xf32>, vector<2x8x8xf32>, vector<2x8x8xf32> -> vector<2x8x8xf32>
    "tpu.trace_stop"() : () -> ()
    %cst_27 = arith.constant dense<0xFF800000> : vector<2x8xf32>
    %73 = vector.multi_reduction <maximumf>, %72, %cst_27 [2] : vector<2x8x8xf32> to vector<2x8xf32>
    %74 = vector.shape_cast %73 : vector<2x8xf32> to vector<2x8x1xf32>
    %75 = vector.broadcast %74 : vector<2x8x1xf32> to vector<2x8x8xf32>
    %76 = arith.subf %72, %75 : vector<2x8x8xf32>
    %77 = math.exp %76 : vector<2x8x8xf32>
    %cst_28 = arith.constant dense<0.000000e+00> : vector<2x8xf32>
    %78 = vector.multi_reduction <add>, %77, %cst_28 [2] : vector<2x8x8xf32> to vector<2x8xf32>
    %79 = vector.shape_cast %78 : vector<2x8xf32> to vector<2x8x1xf32>
    %80 = vector.broadcast %79 : vector<2x8x1xf32> to vector<2x8x8xf32>
    %81 = arith.divf %77, %80 : vector<2x8x8xf32>
    "tpu.trace_start"() <{level = 10 : i32, message = "bnm,bmd->bnd"}> : () -> ()
    %cst_29 = arith.constant dense<0.000000e+00> : vector<2x8x8xf32>
    %82 = tpu.matmul %81, %71, %cst_29 {dimension_numbers = #tpu.dot_dimension_numbers<[2], [1], [1], [2], [0, 0, 0, 1, 1, 2], [0], [0]>} : vector<2x8x8xf32>, vector<2x8x8xf32>, vector<2x8x8xf32> -> vector<2x8x8xf32>
    "tpu.trace_stop"() : () -> ()
    %83 = vector.shape_cast %82 : vector<2x8x8xf32> to vector<16x8xf32>
    %84 = tpu.concatenate %29, %47, %65, %83 in 1 : vector<16x8xf32>, vector<16x8xf32>, vector<16x8xf32>, vector<16x8xf32> -> vector<16x32xf32>
    %c0_30 = arith.constant 0 : index
    %c0_31 = arith.constant 0 : index
    %85 = vector.load %arg5[%c0_30, %c0_31] : memref<32x32xf32, #tpu.memory_space<vmem>>, vector<32x32xf32>
    %cst_32 = arith.constant dense<0.000000e+00> : vector<16x32xf32>
    %86 = tpu.matmul %84, %85, %cst_32 {dimension_numbers = #tpu.dot_dimension_numbers<[1], [0], [0], [1], [0, 0, 1, 1], [], []>} : vector<16x32xf32>, vector<32x32xf32>, vector<16x32xf32> -> vector<16x32xf32>
    %c0_33 = arith.constant 0 : index
    %c0_34 = arith.constant 0 : index
    %87 = vector.load %arg6[%c0_33, %c0_34] : memref<1x32xf32, #tpu.memory_space<vmem>>, vector<1x32xf32>
    %88 = vector.broadcast %87 : vector<1x32xf32> to vector<16x32xf32>
    %89 = arith.addf %86, %88 : vector<16x32xf32>
    %90 = vector.shape_cast %89 : vector<16x32xf32> to vector<2x8x32xf32>
    %c0_35 = arith.constant 0 : index
    %c0_36 = arith.constant 0 : index
    %c0_37 = arith.constant 0 : index
    %91 = vector.load %arg7[%c0_35, %c0_36, %c0_37] : memref<2x8x32xf32, #tpu.memory_space<vmem>>, vector<2x8x32xf32>
    tpu.vector_store %arg7[%c0_35, %c0_36, %c0_37], %90 {strides = array<i32>} : memref<2x8x32xf32, #tpu.memory_space<vmem>>, vector<2x8x32xf32>,
    return
  }
}

</mosaic_0001>

<bundles_post_ra>
// kernel: tpu_custom_call.1
= control target key start
LH: loop header
LB: loop body
LE: loop exit
PB: predicated region body
PF: predicated region fallthrough
CT: control target
= control target key end

     0   :  { %12 = vsyncpa [#allocation3], 0  ;;  %s2634_s0 = inlined_call_operand.hbm [shape: f32[2,8,32], index: 0, kind: input, shape index: {}]   ;;  %s2635_s1 = inlined_call_operand.hbm [shape: f32[2,8,32], index: 1, kind: input, shape index: {}]   ;;  %s2636_s2 = inlined_call_operand.hbm [shape: f32[32,32], index: 2, kind: input, shape index: {}]   ;;  %s2637_s3 = inlined_call_operand.hbm [shape: f32[32,32], index: 3, kind: input, shape index: {}]   ;;  %s2638_s4 = inlined_call_operand.hbm [shape: f32[32,32], index: 4, kind: input, shape index: {}]   ;;  %s2639_s5 = inlined_call_operand.hbm [shape: f32[32,32], index: 5, kind: input, shape index: {}]   ;;  %s2640_s6 = inlined_call_operand.vmem [shape: f32[1,32], index: 6, kind: input, shape index: {}]   ;;  %s2641_s7 = inlined_call_operand.hbm [shape: f32[2,8,32], index: 7, kind: output, shape index: {}]  }
   0x1   :  { %13 = vsyncpa [#allocation6], 0 }
   0x2   :  { %14 = vsyncpa [#allocation9], 0 }
   0x3   :  { %15 = vsyncpa [#allocation12], 0 }
   0x4   :  { %16 = vsyncpa [#allocation4], 0  ;;  %s2281_s24 = smov [#allocation5]   ;;  %s2282_s26 = smov [#allocation8]  }
   0x5   :  { %s34_s25 = sshll.u32 %s2281_s24, 4  ;;  %s58_s27 = sshll.u32 %s2282_s26, 4  ;;  %s35_s25 = int_to_ptr.vmem [resolvable:$true] %s34_s25  ;;  %s2337_s27 = int_to_ptr.vmem [resolvable:$true] %s58_s27 }
   0x6   :  { %s2117_s30 = scalar_lea.hbm %s2635_s1, 256 }
   0x7   :  { %p2118_p0 = scmp.ne.s32.totalorder %s2635_s1, %s2117_s30  ;;  %p2121_p1 = scmp.lt.u32.totalorder %s2117_s30, %s2635_s1 }
   0x9   :  { %p2123_p2 = pnand %p2121_p1, %p2118_p0 }
   0xb   :  { %2126 = shalt.err (!%p2123_p2)
}
   0xc   :  { %s2127_s12 = scalar_lea.vmem %s35_s25, 256  ;;  %p2132_p4 = scmp.lt.s32.totalorder %s35_s25, %s35_s25 }
   0xd   :  { %p2128_p3 = scmp.ne.s32.totalorder %s35_s25, %s2127_s12  ;;  %p2133_p5 = scmp.lt.s32.totalorder %s2127_s12, %s2127_s12 }
   0xf   :  { %p2134_p6 = por %p2133_p5, %p2132_p4 }
  0x11   :  { %p2135_p7 = pnand %p2134_p6, %p2128_p3 }
  0x13   :  { %2138 = shalt.err (!%p2135_p7)
}
  0x14   :  { %s2283_s13 = smov 128   ;;  %s2284_s14 = smov 8  }
  0x15   :  { %40 = dma.hbm_to_vmem [thread:$0]  %s2635_s1, 256, %s35_s25, [#allocation6], %s2283_s13, %s2283_s13, %s2284_s14  }
  0x16   :  { %s2139_s19 = scalar_lea.hbm %s2637_s3, 512 }
  0x17   :  { %p2140_p8 = scmp.ne.s32.totalorder %s2637_s3, %s2139_s19  ;;  %p2143_p9 = scmp.lt.u32.totalorder %s2139_s19, %s2637_s3 }
  0x19   :  { %p2145_p10 = pnand %p2143_p9, %p2140_p8 }
  0x1b   :  { %2148 = shalt.err (!%p2145_p10)
}
  0x1c   :  { %s2149_s24 = scalar_lea.vmem %s2337_s27, 512  ;;  %p2154_p12 = scmp.lt.s32.totalorder %s2337_s27, %s2337_s27 }
  0x1d   :  { %p2150_p11 = scmp.ne.s32.totalorder %s2337_s27, %s2149_s24  ;;  %p2155_p13 = scmp.lt.s32.totalorder %s2149_s24, %s2149_s24 }
  0x1f   :  { %p2156_p0 = por %p2155_p13, %p2154_p12 }
  0x21   :  { %p2157_p1 = pnand %p2156_p0, %p2150_p11 }
  0x23   :  { %2160 = shalt.err (!%p2157_p1)
}
  0x24   :  { %64 = dma.hbm_to_vmem [thread:$0]  %s2637_s3, 512, %s2337_s27, [#allocation9], %s2283_s13, %s2283_s13, %s2284_s14  }
  0x25   :  { %s2285_s26 = smov [#allocation2]   ;;  %s2286_s29 = smov [#allocation7]  }
  0x26   :  { %s22_s28 = sshll.u32 %s2285_s26, 4  ;;  %s46_s30 = sshll.u32 %s2286_s29, 4  ;;  %s23_s28 = int_to_ptr.vmem [resolvable:$true] %s22_s28  ;;  %s2374_s30 = int_to_ptr.vmem [resolvable:$true] %s46_s30 }
  0x27   :  { %s2161_s10 = scalar_lea.hbm %s2634_s0, 256 }
  0x28   :  { %p2162_p2 = scmp.ne.s32.totalorder %s2634_s0, %s2161_s10  ;;  %p2165_p3 = scmp.lt.u32.totalorder %s2161_s10, %s2634_s0 }
  0x2a   :  { %p2167_p4 = pnand %p2165_p3, %p2162_p2 }
  0x2c   :  { %2170 = shalt.err (!%p2167_p4)
}
  0x2d   :  { %s2171_s3 = scalar_lea.vmem %s23_s28, 256  ;;  %p2176_p6 = scmp.lt.s32.totalorder %s23_s28, %s23_s28 }
  0x2e   :  { %p2172_p5 = scmp.ne.s32.totalorder %s23_s28, %s2171_s3  ;;  %p2177_p7 = scmp.lt.s32.totalorder %s2171_s3, %s2171_s3 }
  0x30   :  { %p2178_p8 = por %p2177_p7, %p2176_p6 }
  0x32   :  { %p2179_p9 = pnand %p2178_p8, %p2172_p5 }
  0x34   :  { %2182 = shalt.err (!%p2179_p9)
}
  0x35   :  { %28 = dma.hbm_to_vmem [thread:$0]  %s2634_s0, 256, %s23_s28, [#allocation3], %s2283_s13, %s2283_s13, %s2284_s14  }
  0x36   :  { %s2183_s20 = scalar_lea.hbm %s2636_s2, 512 }
  0x37   :  { %p2184_p10 = scmp.ne.s32.totalorder %s2636_s2, %s2183_s20  ;;  %p2187_p11 = scmp.lt.u32.totalorder %s2183_s20, %s2636_s2 }
  0x39   :  { %p2189_p12 = pnand %p2187_p11, %p2184_p10 }
  0x3b   :  { %2192 = shalt.err (!%p2189_p12)
}
  0x3c   :  { %s2193_s1 = scalar_lea.vmem %s2374_s30, 512  ;;  %p2198_p0 = scmp.lt.s32.totalorder %s2374_s30, %s2374_s30 }
  0x3d   :  { %p2194_p13 = scmp.ne.s32.totalorder %s2374_s30, %s2193_s1  ;;  %p2199_p1 = scmp.lt.s32.totalorder %s2193_s1, %s2193_s1 }
  0x3f   :  { %p2200_p2 = por %p2199_p1, %p2198_p0 }
  0x41   :  { %p2201_p3 = pnand %p2200_p2, %p2194_p13 }
  0x43   :  { %2204 = shalt.err (!%p2201_p3)
}
  0x44   :  { %52 = dma.hbm_to_vmem [thread:$0]  %s2636_s2, 512, %s2374_s30, [#allocation6], %s2283_s13, %s2283_s13, %s2284_s14  }
  0x45   :  { %s2287_s26 = smov [#allocation10]   ;;  %s2288_s29 = smov [#allocation11]  }
  0x46   :  { %s70_s28 = sshll.u32 %s2287_s26, 4  ;;  %s82_s8 = sshll.u32 %s2288_s29, 4  ;;  %s71_s28 = int_to_ptr.vmem [resolvable:$true] %s70_s28  ;;  %s2411_s8 = int_to_ptr.vmem [resolvable:$true] %s82_s8 }
  0x47   :  { %s2205_s11 = scalar_lea.hbm %s2638_s4, 512 }
  0x48   :  { %p2206_p4 = scmp.ne.s32.totalorder %s2638_s4, %s2205_s11  ;;  %p2209_p5 = scmp.lt.u32.totalorder %s2205_s11, %s2638_s4 }
  0x4a   :  { %p2211_p6 = pnand %p2209_p5, %p2206_p4 }
  0x4c   :  { %2214 = shalt.err (!%p2211_p6)
}
  0x4d   :  { %s2215_s2 = scalar_lea.vmem %s71_s28, 512  ;;  %p2220_p8 = scmp.lt.s32.totalorder %s71_s28, %s71_s28 }
  0x4e   :  { %p2216_p7 = scmp.ne.s32.totalorder %s71_s28, %s2215_s2  ;;  %p2221_p9 = scmp.lt.s32.totalorder %s2215_s2, %s2215_s2 }
  0x50   :  { %p2222_p10 = por %p2221_p9, %p2220_p8 }
  0x52   :  { %p2223_p11 = pnand %p2222_p10, %p2216_p7 }
  0x54   :  { %2226 = shalt.err (!%p2223_p11)
}
  0x55   :  { %76 = dma.hbm_to_vmem [thread:$0]  %s2638_s4, 512, %s71_s28, [#allocation9], %s2283_s13, %s2283_s13, %s2284_s14  }
  0x56   :  { %s2227_s19 = scalar_lea.hbm %s2639_s5, 512 }
  0x57   :  { %p2228_p12 = scmp.ne.s32.totalorder %s2639_s5, %s2227_s19  ;;  %p2231_p13 = scmp.lt.u32.totalorder %s2227_s19, %s2639_s5 }
  0x59   :  { %p2233_p0 = pnand %p2231_p13, %p2228_p12 }
  0x5b   :  { %2236 = shalt.err (!%p2233_p0)
}
  0x5c   :  { %s2237_s24 = scalar_lea.vmem %s2411_s8, 512  ;;  %p2242_p2 = scmp.lt.s32.totalorder %s2411_s8, %s2411_s8 }
  0x5d   :  { %p2238_p1 = scmp.ne.s32.totalorder %s2411_s8, %s2237_s24  ;;  %p2243_p3 = scmp.lt.s32.totalorder %s2237_s24, %s2237_s24 }
  0x5f   :  { %p2244_p4 = por %p2243_p3, %p2242_p2 }
  0x61   :  { %p2245_p5 = pnand %p2244_p4, %p2238_p1 }
  0x63   :  { %2248 = shalt.err (!%p2245_p5)
}
  0x64   :  { %88 = dma.hbm_to_vmem [thread:$0]  %s2639_s5, 512, %s2411_s8, [#allocation12], %s2283_s13, %s2283_s13, %s2284_s14  }
  0x65   :  { %2271 = dma.done.wait [#allocation3], 256  }
  0x66   :  { %2272 = vsyncadd [#allocation3], 4294967040 }
  0x67   :  { %2273 = dma.done.wait [#allocation6], 768  }
  0x68   :  { %2274 = vsyncadd [#allocation6], 4294966528 }
  0x69   :  { %2275 = dma.done.wait [#allocation9], 1024  }
  0x6a   :  { %2276 = vsyncadd [#allocation9], 4294966272 }
  0x6b   :  { %2277 = dma.done.wait [#allocation12], 512  }
  0x6c   :  { %2278 = vsyncadd [#allocation12], 4294966784  ;;  %v201_v0 = vld [vmem:[#allocation8] sm:$0xff]  ;;  %v202_v1 = vld [vmem:[#allocation8 + $0x8] sm:$0xff]  ;;  %vm119_vm0 = vcmask 261120   ;;  %v2289_v18 = vmov 0.0  }
  0x6d   :  { %v115_v2 = vld [vmem:[#allocation7] sm:$0xff]  ;;  %v2045_v3 = vpack.c.bf16 %v202_v1, %v201_v0  ;;  %v116_v4 = vld [vmem:[#allocation7 + $0x8] sm:$0xff]  ;;  %v203_v5 = vld [vmem:[#allocation8 + $0x10] sm:$0xff]  ;;  %vm2290_vm1 = vmmov 0   ;;  %vm365_vm2 = vcmask 64512   ;;  %s2291_s5 = smov 120  }
  0x6e   :  { %v204_v6 = vld [vmem:[#allocation8 + $0x18] sm:$0xff]  ;;  %v2037_v7 = vpack.c.bf16 %v116_v4, %v115_v2  ;;  %v117_v9 = vld [vmem:[#allocation7 + $0x10] sm:$0xff]  ;;  %v109_v13 = vld [vmem:[#allocation2] sm:$0xff]  ;;  %s2292_s0 = smov 112   ;;  %s2293_s25 = smov 104   ;;  %vm1707_vm3 = vcmask 195584  }
  0x6f   :  { %v2049_v8 = vpack.c.bf16 %v204_v6, %v203_v5  ;;  %v118_v10 = vld [vmem:[#allocation7 + $0x18] sm:$0xff]  ;;  %v113_v11 = vld [vmem:[#allocation5] sm:$0xff]  ;;  %2046 = vmatprep.subr.bf16.mxu1 %v2045_v3  ;;  %v111_v14 = vmul.f32 0.17677669, %v109_v13  ;;  %v110_v15 = vld [vmem:[#allocation2 + $0x8] sm:$0xff]  ;;  %s2294_s26 = smov 16  }
  0x70   :  { %v2041_v12 = vpack.c.bf16 %v118_v10, %v117_v9  ;;  %1932 = vmatprep.mubr.msk.f32.mxu1 %vm119_vm0, %v113_v11  ;;  %2048 = vmatpush3.bf16.msra.mxu1 %v2045_v3  ;;  %v114_v16 = vld [vmem:[#allocation5 + $0x8] sm:$0xff]  ;;  %v112_v17 = vmul.f32 0.17677669, %v110_v15  ;;  %v286_v23 = vld [vmem:[#allocation10] sm:$0xff]  ;;  %v287_v24 = vld [vmem:[#allocation10 + $0x8] sm:$0xff]  ;;  %s2295_s28 = smov 24  }
  0x71   :  { %2038 = vmatprep.subr.bf16.mxu0 %v2037_v7  ;;  %2050 = vmatprep.subr.bf16.mxu1 %v2049_v8  ;;  %v288_v25 = vld [vmem:[#allocation10 + $0x10] sm:$0xff]  ;;  %v2053_v26 = vpack.c.bf16 %v287_v24, %v286_v23  ;;  %v289_v27 = vld [vmem:[#allocation10 + $0x18] sm:$0xff]  ;;  %vm1704_vm4 = vcmask 130048   ;;  %s2296_s9 = smov [#allocation13]  }
  0x72   :  { %2040 = vmatpush3.bf16.msra.mxu0 %v2037_v7  ;;  %1921 = vmatprep.mubr.msk.f32.mxu0 %vm119_vm0, %v111_v14  ;;  %v2057_v28 = vpack.c.bf16 %v289_v27, %v288_v25  ;;  %s1809_s10 = sshll.u32 %s2296_s9, 4  ;;  %s1810_s10 = int_to_ptr.vmem [resolvable:$true] %s1809_s10 }
  0x73   :  { %2042 = vmatprep.subr.bf16.mxu0 %v2041_v12  ;;  %s2249_s11 = scalar_lea.vmem %s1810_s10, 256  ;;  %p2254_p7 = scmp.lt.s32.totalorder %s1810_s10, %s1810_s10 }
  0x74   :  { %2052 = vmatpush3.bf16.msra.mxu1 %v2049_v8  ;;  %p2250_p6 = scmp.ne.s32.totalorder %s1810_s10, %s2249_s11  ;;  %p2255_p8 = scmp.lt.s32.totalorder %s2249_s11, %s2249_s11 }
  0x75   :  { %1946 = vmatprep.subr.mxu1 %v2289_v18 }
  0x76   :  { %2044 = vmatpush3.bf16.msra.mxu0 %v2041_v12  ;;  %p2256_p9 = por %p2255_p8, %p2254_p7 }
  0x77   :  { %1933 = vmatmul.mubr.msk.f32.vlgmr.msra.gmra.mrb[0].mxu1 %vm119_vm0, %v114_v16  ;;  %2054 = vmatprep.subr.bf16.mxu0 %v2053_v26 }
  0x78   :  { %1948 = vmatprep.mubr.msk.f32.mxu1 %vm2290_vm1, %v2289_v18  ;;  %p2257_p10 = pnand %p2256_p9, %p2250_p6 }
  0x79   :  { %1922 = vmatmul.mubr.msk.f32.vlgmr.msra.gmra.mrb[0].mxu0 %vm119_vm0, %v112_v17 }
  0x7a   :  { %1943 = vmatprep.mubr.msk.f32.mxu0 %vm119_vm0, %v113_v11  ;;  %2056 = vmatpush3.bf16.msra.mxu0 %v2053_v26 }
  0x7b   :  { %2058 = vmatprep.subr.bf16.mxu0 %v2057_v28 }
  0x7e   :  { %2060 = vmatpush3.bf16.msra.mxu0 %v2057_v28 }
  0x7f   :  { %1966 = vmatprep.subr.mxu0 %v2289_v18 }
  0x81   :  { %1944 = vmatmul.mubr.msk.f32.vlgmr.msra.gmra.mrb[2].mxu0 %vm119_vm0, %v114_v16 }
  0x82   :  { %1968 = vmatprep.mubr.msk.f32.mxu0 %vm2290_vm1, %v2289_v18 }
 0x14a   :  { %v2456_v19 = vpop.f32.mrb[0].mxu1 }
 0x14b   :  { %766 = vrot.lane.b32.xlu1 %v2456_v19, %s2291_s5  ;;  %v2460_v20 = vpop.f32.mrb[1].mxu1 }
 0x14c   :  { %v2462_v21 = vpop.f32.mrb[0].mxu0  ;;  %1947 = vmatpush3.xpose.msk.msra.mxu1 %vm365_vm2, %v2460_v20 }
 0x14d   :  { %v2466_v22 = vpop.f32.mrb[1].mxu0  ;;  %1951 = vmatprep.subr.mxu1 %v2289_v18 }
 0x14f   :  { %686 = vrot.lane.b32.xlu1 %v2466_v22, %s2291_s5  ;;  %1949 = vmatmul.mubr.msk.f32.vlgmr.msra.gmra.mrb[2].mxu1 %vm365_vm2, %v2466_v22 }
 0x150   :  { %1952 = vmatpush3.xpose.msk.msra.mxu1 %vm365_vm2, %v2456_v19  ;;  %1953 = vmatprep.mubr.msk.f32.mxu1 %vm2290_vm1, %v2289_v18 }
 0x151   :  { %1956 = vmatprep.subr.mxu1 %v2289_v18 }
 0x153   :  { %1954 = vmatmul.mubr.msk.f32.vlgmr.msra.gmra.mrb[4].mxu1 %vm365_vm2, %v2462_v21 }
 0x154   :  { %1958 = vmatprep.mubr.msk.f32.mxu1 %vm2290_vm1, %v2289_v18  ;;  %v2499_v48 = vpop.f32.mrb[2].mxu0 }
 0x155   :  { %v2501_v49 = vpop.f32.mrb[3].mxu0 }
 0x156   :  { %1957 = vmatpush3.msra.mxu1 %v2501_v49 }
 0x157   :  { %1961 = vmatprep.subr.mxu1 %v2289_v18 }
 0x1bd   :  { %v767_v39 = vpop.permute.xlu1 %766 }
 0x1c1   :  { %v687_v43 = vpop.permute.xlu1 %686 }
 0x222   :  { %v438_v29 = vpop.f32.mrb[2].mxu1 }
 0x223   :  { %v1950_v30 = vpop.f32.mrb[3].mxu1  ;;  %v518_v31 = vsel %vm365_vm2, %v438_v29, -inf }
 0x224   :  { %519 = vmax.xlane.f32.xlu0 %v518_v31 }
 0x226   :  { %v514_v32 = vpop.f32.mrb[4].mxu1 }
 0x227   :  { %v1955_v33 = vpop.f32.mrb[5].mxu1  ;;  %v521_v34 = vsel %vm365_vm2, %v514_v32, -inf }
 0x228   :  { %522 = vmax.xlane.f32.xlu0 %v521_v34 }
 0x23e   :  { %688 = vrot.lane.b32.xlu0 %v2460_v20, %s2291_s5 }
 0x2b1   :  { %v520_v35 = vpop.xlane.xlu0 %519 }
 0x2b2   :  { %v524_v36 = vsub.f32 %v438_v29, %v520_v35 }
 0x2b4   :  { %v526_v37 = vmul.f32 1.442695, %v524_v36 }
 0x2b5   :  { %v523_v38 = vpop.xlane.xlu0 %522 }
 0x2b6   :  { %2085 = vpow2.f32 %v526_v37  ;;  %v525_v40 = vsub.f32 %v514_v32, %v523_v38 }
 0x2b8   :  { %v528_v41 = vmul.f32 1.442695, %v525_v40 }
 0x2b9   :  { %v689_v42 = vpop.permute.xlu0 %688 }
 0x2ba   :  { %2087 = vpow2.f32 %v528_v41  ;;  %1967 = vmatpush3.xpose.msk.msra.mxu0 %vm365_vm2, %v689_v42 }
 0x2bb   :  { %1976 = vmatprep.subr.mxu0 %v2289_v18 }
 0x2bd   :  { %1969 = vmatmul.mubr.msk.f32.vlgmr.msra.gmra.mrb[4].mxu0 %vm365_vm2, %v687_v43 }
 0x2be   :  { %1978 = vmatprep.mubr.msk.f32.mxu0 %vm2290_vm1, %v2289_v18 }
 0x2c0   :  { %v2086_v44 = vpop.eup %2085 }
 0x2c1   :  { %v530_v45 = vsel %vm365_vm2, %v2086_v44, 0.0 }
 0x2c2   :  { %531 = vadd.xlane.f32.xlu1 %v530_v45 }
 0x2c4   :  { %v2088_v46 = vpop.eup %2087 }
 0x2c5   :  { %v533_v47 = vsel %vm365_vm2, %v2088_v46, 0.0 }
 0x2c6   :  { %534 = vadd.xlane.f32.xlu1 %v533_v47 }
 0x2d7   :  { %764 = vrot.lane.b32.xlu1 %v2462_v21, %s2291_s5 }
 0x34f   :  { %v532_v50 = vpop.xlane.xlu1 %531 }
 0x350   :  { %2089 = vrcp.f32 %v532_v50 }
 0x353   :  { %v535_v51 = vpop.xlane.xlu1 %534 }
 0x354   :  { %2091 = vrcp.f32 %v535_v51 }
 0x357   :  { %v765_v56 = vpop.permute.xlu1 %764 }
 0x35a   :  { %v2090_v52 = vpop.eup %2089 }
 0x35b   :  { %v537_v53 = vmul.f32 %v2090_v52, %v2086_v44 }
 0x35d   :  { %1959 = vmatmul.mubr.msk.f32.vlgmr.msra.gmra.mrb[6].mxu1 %vm365_vm2, %v537_v53 }
 0x35e   :  { %v2092_v54 = vpop.eup %2091  ;;  %1962 = vmatpush3.msra.mxu1 %v2499_v48  ;;  %1963 = vmatprep.mubr.msk.f32.mxu1 %vm2290_vm1, %v2289_v18 }
 0x35f   :  { %v539_v55 = vmul.f32 %v2092_v54, %v2088_v46  ;;  %1971 = vmatprep.subr.mxu1 %v2289_v18 }
 0x361   :  { %1964 = vmatmul.mubr.msk.f32.vlgmr.msra.gmra.mrb[8].mxu1 %vm365_vm2, %v539_v55 }
 0x362   :  { %1973 = vmatprep.mubr.msk.f32.mxu1 %vm2290_vm1, %v2289_v18 }
 0x365   :  { %1972 = vmatpush3.xpose.msk.msra.mxu1 %vm365_vm2, %v767_v39 }
 0x366   :  { %1981 = vmatprep.subr.mxu1 %v2289_v18 }
 0x368   :  { %1974 = vmatmul.mubr.msk.f32.vlgmr.msra.gmra.mrb[10].mxu1 %vm365_vm2, %v765_v56 }
 0x369   :  { %1983 = vmatprep.mubr.msk.f32.mxu1 %vm2290_vm1, %v2289_v18 }
 0x390   :  { %v760_v57 = vpop.f32.mrb[4].mxu0 }
 0x391   :  { %v1970_v58 = vpop.f32.mrb[5].mxu0  ;;  %v842_v59 = vsel %vm365_vm2, %v760_v57, -inf }
 0x392   :  { %843 = vmax.xlane.f32.xlu0 %v842_v59 }
 0x41f   :  { %v844_v60 = vpop.xlane.xlu0 %843 }
 0x420   :  { %v848_v61 = vsub.f32 %v760_v57, %v844_v60 }
 0x422   :  { %v850_v62 = vmul.f32 1.442695, %v848_v61 }
 0x424   :  { %2093 = vpow2.f32 %v850_v62 }
 0x42e   :  { %v2094_v63 = vpop.eup %2093 }
 0x42f   :  { %v854_v0 = vsel %vm365_vm2, %v2094_v63, 0.0 }
 0x430   :  { %855 = vadd.xlane.f32.xlu0 %v854_v0  ;;  %v2520_v1 = vpop.f32.mrb[6].mxu1 }
 0x431   :  { %v1960_v2 = vpop.f32.mrb[7].mxu1 }
 0x434   :  { %v2522_v3 = vpop.f32.mrb[8].mxu1 }
 0x435   :  { %v1965_v4 = vpop.f32.mrb[9].mxu1 }
 0x43b   :  { %v838_v5 = vpop.f32.mrb[10].mxu1 }
 0x43c   :  { %v1975_v6 = vpop.f32.mrb[11].mxu1  ;;  %v845_v7 = vsel %vm365_vm2, %v838_v5, -inf }
 0x43d   :  { %846 = vmax.xlane.f32.xlu1 %v845_v7 }
 0x446   :  { %865 = vrot.lane.b32.xlu0 %v2501_v49, %s2291_s5 }
 0x44e   :  { %942 = vrot.lane.b32.xlu1 %v2499_v48, %s2291_s5 }
 0x452   :  { %1020 = vrot.lane.b32.xlu1 %v2460_v20, %s2292_s0 }
 0x456   :  { %1098 = vrot.lane.b32.xlu1 %v2456_v19, %s2292_s0 }
 0x45a   :  { %1096 = vrot.lane.b32.xlu1 %v2462_v21, %s2292_s0 }
 0x4bd   :  { %v856_v8 = vpop.xlane.xlu0 %855 }
 0x4be   :  { %2095 = vrcp.f32 %v856_v8 }
 0x4c1   :  { %v866_v9 = vpop.permute.xlu0 %865 }
 0x4c2   :  { %1977 = vmatpush3.msra.mxu0 %v866_v9 }
 0x4c3   :  { %1986 = vmatprep.subr.mxu0 %v2289_v18 }
 0x4c8   :  { %v2096_v10 = vpop.eup %2095 }
 0x4c9   :  { %v861_v11 = vmul.f32 %v2096_v10, %v2094_v63 }
 0x4ca   :  { %v847_v12 = vpop.xlane.xlu1 %846 }
 0x4cb   :  { %v849_v13 = vsub.f32 %v838_v5, %v847_v12  ;;  %1979 = vmatmul.mubr.msk.f32.vlgmr.msra.gmra.mrb[6].mxu0 %vm365_vm2, %v861_v11 }
 0x4cc   :  { %1988 = vmatprep.mubr.msk.f32.mxu0 %vm2290_vm1, %v2289_v18 }
 0x4cd   :  { %v852_v14 = vmul.f32 1.442695, %v849_v13 }
 0x4ce   :  { %v943_v15 = vpop.permute.xlu1 %942 }
 0x4cf   :  { %2097 = vpow2.f32 %v852_v14  ;;  %1982 = vmatpush3.msra.mxu1 %v943_v15 }
 0x4d0   :  { %1991 = vmatprep.subr.mxu1 %v2289_v18 }
 0x4d2   :  { %v1021_v16 = vpop.permute.xlu1 %1020 }
 0x4d3   :  { %1987 = vmatpush3.xpose.msk.msra.mxu0 %vm365_vm2, %v1021_v16 }
 0x4d4   :  { %1996 = vmatprep.subr.mxu0 %v2289_v18 }
 0x4d6   :  { %v1099_v27 = vpop.permute.xlu1 %1098 }
 0x4d9   :  { %v2098_v17 = vpop.eup %2097 }
 0x4da   :  { %v857_v23 = vsel %vm365_vm2, %v2098_v17, 0.0  ;;  %v1097_v29 = vpop.permute.xlu1 %1096 }
 0x4db   :  { %858 = vadd.xlane.f32.xlu0 %v857_v23 }
 0x4f1   :  { %1018 = vrot.lane.b32.xlu0 %v2466_v22, %s2292_s0 }
 0x568   :  { %v859_v24 = vpop.xlane.xlu0 %858 }
 0x569   :  { %2099 = vrcp.f32 %v859_v24 }
 0x56c   :  { %v1019_v25 = vpop.permute.xlu0 %1018 }
 0x56d   :  { %1989 = vmatmul.mubr.msk.f32.vlgmr.msra.gmra.mrb[8].mxu0 %vm365_vm2, %v1019_v25 }
 0x56e   :  { %1998 = vmatprep.mubr.msk.f32.mxu0 %vm2290_vm1, %v2289_v18 }
 0x573   :  { %v2100_v26 = vpop.eup %2099 }
 0x574   :  { %v863_v28 = vmul.f32 %v2100_v26, %v2098_v17 }
 0x576   :  { %1984 = vmatmul.mubr.msk.f32.vlgmr.msra.gmra.mrb[12].mxu1 %vm365_vm2, %v863_v28 }
 0x577   :  { %1992 = vmatpush3.xpose.msk.msra.mxu1 %vm365_vm2, %v1099_v27  ;;  %1993 = vmatprep.mubr.msk.f32.mxu1 %vm2290_vm1, %v2289_v18 }
 0x578   :  { %2001 = vmatprep.subr.mxu1 %v2289_v18 }
 0x57a   :  { %1994 = vmatmul.mubr.msk.f32.vlgmr.msra.gmra.mrb[14].mxu1 %vm365_vm2, %v1097_v29  ;;  %v1710_v29 = vld [vmem:[#allocation11] sm:$0xff] }
 0x57b   :  { %2003 = vmatprep.mubr.msk.f32.mxu1 %vm2290_vm1, %v2289_v18 }
 0x59e   :  { %v2556_v30 = vpop.f32.mrb[6].mxu0 }
 0x59f   :  { %v1980_v31 = vpop.f32.mrb[7].mxu0 }
 0x640   :  { %v1092_v32 = vpop.f32.mrb[8].mxu0 }
 0x641   :  { %v1990_v33 = vpop.f32.mrb[9].mxu0  ;;  %v1174_v34 = vsel %vm365_vm2, %v1092_v32, -inf }
 0x642   :  { %1175 = vmax.xlane.f32.xlu0 %v1174_v34 }
 0x649   :  { %v2559_v35 = vpop.f32.mrb[12].mxu1 }
 0x64a   :  { %v1985_v36 = vpop.f32.mrb[13].mxu1 }
 0x64d   :  { %v1170_v37 = vpop.f32.mrb[14].mxu1 }
 0x64e   :  { %v1995_v38 = vpop.f32.mrb[15].mxu1  ;;  %v1177_v39 = vsel %vm365_vm2, %v1170_v37, -inf }
 0x64f   :  { %1178 = vmax.xlane.f32.xlu1 %v1177_v39 }
 0x660   :  { %1272 = vrot.lane.b32.xlu1 %v2499_v48, %s2292_s0 }
 0x664   :  { %1350 = vrot.lane.b32.xlu1 %v2460_v20, %s2293_s25 }
 0x668   :  { %1428 = vrot.lane.b32.xlu1 %v2456_v19, %s2293_s25 }
 0x66c   :  { %1426 = vrot.lane.b32.xlu1 %v2462_v21, %s2293_s25 }
 0x6cf   :  { %v1176_v40 = vpop.xlane.xlu0 %1175 }
 0x6d0   :  { %v1180_v41 = vsub.f32 %v1092_v32, %v1176_v40  ;;  %v1712_v32 = vld [vmem:[#allocation11 + $0x10] sm:$0xff] }
 0x6d2   :  { %v1182_v42 = vmul.f32 1.442695, %v1180_v41 }
 0x6d4   :  { %2101 = vpow2.f32 %v1182_v42 }
 0x6dc   :  { %v1179_v43 = vpop.xlane.xlu1 %1178 }
 0x6dd   :  { %v1181_v19 = vsub.f32 %v1170_v37, %v1179_v43 }
 0x6de   :  { %v2102_v44 = vpop.eup %2101 }
 0x6df   :  { %v1186_v45 = vsel %vm365_vm2, %v2102_v44, 0.0  ;;  %v1184_v20 = vmul.f32 1.442695, %v1181_v19 }
 0x6e0   :  { %1187 = vadd.xlane.f32.xlu0 %v1186_v45  ;;  %v1273_v46 = vpop.permute.xlu1 %1272 }
 0x6e1   :  { %2002 = vmatpush3.msra.mxu1 %v1273_v46  ;;  %2103 = vpow2.f32 %v1184_v20 }
 0x6e2   :  { %2011 = vmatprep.subr.mxu1 %v2289_v18 }
 0x6e4   :  { %v1351_v54 = vpop.permute.xlu1 %1350 }
 0x6e8   :  { %v1429_v57 = vpop.permute.xlu1 %1428 }
 0x6eb   :  { %v2104_v21 = vpop.eup %2103 }
 0x6ec   :  { %v1189_v47 = vsel %vm365_vm2, %v2104_v21, 0.0  ;;  %v1427_v59 = vpop.permute.xlu1 %1426 }
 0x6f6   :  { %1196 = vrot.lane.b32.xlu0 %v2501_v49, %s2292_s0 }
 0x715   :  { %1190 = vadd.xlane.f32.xlu0 %v1189_v47  ;;  %v1854_v47 = vld [vmem:[%s2640_s6] ss:$0 sm:$0xff] }
 0x72b   :  { %1348 = vrot.lane.b32.xlu0 %v2466_v22, %s2293_s25 }
 0x76d   :  { %v1188_v50 = vpop.xlane.xlu0 %1187 }
 0x76e   :  { %2105 = vrcp.f32 %v1188_v50 }
 0x771   :  { %v1197_v51 = vpop.permute.xlu0 %1196 }
 0x772   :  { %1997 = vmatpush3.msra.mxu0 %v1197_v51 }
 0x773   :  { %2006 = vmatprep.subr.mxu0 %v2289_v18 }
 0x778   :  { %v2106_v52 = vpop.eup %2105 }
 0x779   :  { %v1193_v53 = vmul.f32 %v2106_v52, %v2102_v44 }
 0x77b   :  { %1999 = vmatmul.mubr.msk.f32.vlgmr.msra.gmra.mrb[10].mxu0 %vm365_vm2, %v1193_v53 }
 0x77c   :  { %2007 = vmatpush3.xpose.msk.msra.mxu0 %vm365_vm2, %v1351_v54  ;;  %2008 = vmatprep.mubr.msk.f32.mxu0 %vm2290_vm1, %v2289_v18 }
 0x77d   :  { %2016 = vmatprep.subr.mxu0 %v2289_v18 }
 0x7a2   :  { %v1191_v55 = vpop.xlane.xlu0 %1190 }
 0x7a3   :  { %2107 = vrcp.f32 %v1191_v55 }
 0x7a6   :  { %v1349_v22 = vpop.permute.xlu0 %1348 }
 0x7a7   :  { %2009 = vmatmul.mubr.msk.f32.vlgmr.msra.gmra.mrb[12].mxu0 %vm365_vm2, %v1349_v22 }
 0x7a8   :  { %2018 = vmatprep.mubr.msk.f32.mxu0 %vm2290_vm1, %v2289_v18 }
 0x7ad   :  { %v2108_v56 = vpop.eup %2107 }
 0x7ae   :  { %v1195_v58 = vmul.f32 %v2108_v56, %v2104_v21 }
 0x7b0   :  { %2004 = vmatmul.mubr.msk.f32.vlgmr.msra.gmra.mrb[16].mxu1 %vm365_vm2, %v1195_v58 }
 0x7b1   :  { %2012 = vmatpush3.xpose.msk.msra.mxu1 %vm365_vm2, %v1429_v57  ;;  %2013 = vmatprep.mubr.msk.f32.mxu1 %vm2290_vm1, %v2289_v18 }
 0x7b2   :  { %2021 = vmatprep.subr.mxu1 %v2289_v18 }
 0x7b4   :  { %2014 = vmatmul.mubr.msk.f32.vlgmr.msra.gmra.mrb[18].mxu1 %vm365_vm2, %v1427_v59 }
 0x7b5   :  { %2023 = vmatprep.mubr.msk.f32.mxu1 %vm2290_vm1, %v2289_v18 }
 0x84e   :  { %v1268_v60 = vpop.f32.mrb[10].mxu0 }
 0x84f   :  { %v2000_v61 = vpop.f32.mrb[11].mxu0 }
 0x87a   :  { %v1422_v62 = vpop.f32.mrb[12].mxu0 }
 0x87b   :  { %v2010_v63 = vpop.f32.mrb[13].mxu0  ;;  %v1504_v0 = vsel %vm365_vm2, %v1422_v62, -inf }
 0x87c   :  { %1505 = vmax.xlane.f32.xlu0 %v1504_v0 }
 0x883   :  { %v1344_v2 = vpop.f32.mrb[16].mxu1 }
 0x884   :  { %v2005_v4 = vpop.f32.mrb[17].mxu1 }
 0x887   :  { %v1500_v5 = vpop.f32.mrb[18].mxu1 }
 0x888   :  { %v2015_v6 = vpop.f32.mrb[19].mxu1  ;;  %v1507_v7 = vsel %vm365_vm2, %v1500_v5, -inf }
 0x889   :  { %1508 = vmax.xlane.f32.xlu1 %v1507_v7 }
 0x89a   :  { %1602 = vrot.lane.b32.xlu1 %v2499_v48, %s2293_s25 }
 0x89e   :  { %1680 = vrot.lane.b32.xlu1 %v2556_v30, %s2284_s14  ;;  %v1711_v30 = vld [vmem:[#allocation11 + $0x8] sm:$0xff] }
 0x89f   :  { %v2061_v31 = vpack.c.bf16 %v1711_v30, %v1710_v29 }
 0x8a2   :  { %1682 = vrot.lane.b32.xlu1 %v2559_v35, %s2284_s14 }
 0x8a6   :  { %1690 = vrot.lane.b32.xlu1 %v1344_v2, %s2294_s26 }
 0x909   :  { %v1506_v18 = vpop.xlane.xlu0 %1505 }
 0x90a   :  { %v1510_v8 = vsub.f32 %v1422_v62, %v1506_v18 }
 0x90c   :  { %v1512_v9 = vmul.f32 1.442695, %v1510_v8 }
 0x90e   :  { %2109 = vpow2.f32 %v1512_v9 }
 0x916   :  { %v1509_v10 = vpop.xlane.xlu1 %1508 }
 0x917   :  { %v1511_v11 = vsub.f32 %v1500_v5, %v1509_v10 }
 0x918   :  { %v2110_v12 = vpop.eup %2109 }
 0x919   :  { %v1514_v13 = vmul.f32 1.442695, %v1511_v11  ;;  %v1516_v14 = vsel %vm365_vm2, %v2110_v12, 0.0 }
 0x91a   :  { %1517 = vadd.xlane.f32.xlu0 %v1516_v14  ;;  %v1603_v48 = vpop.permute.xlu1 %1602 }
 0x91b   :  { %2111 = vpow2.f32 %v1514_v13  ;;  %2022 = vmatpush3.msra.mxu1 %v1603_v48 }
 0x91e   :  { %v1681_v38 = vpop.permute.xlu1 %1680 }
 0x91f   :  { %v1702_v41 = vsel %vm365_vm2, %v2520_v1, %v1681_v38 }
 0x922   :  { %v1683_v40 = vpop.permute.xlu1 %1682 }
 0x923   :  { %v1703_v46 = vsel %vm365_vm2, %v2522_v3, %v1683_v40 }
 0x925   :  { %v2112_v15 = vpop.eup %2111 }
 0x926   :  { %v1519_v16 = vsel %vm365_vm2, %v2112_v15, 0.0  ;;  %v1691_v45 = vpop.permute.xlu1 %1690 }
 0x927   :  { %1520 = vadd.xlane.f32.xlu0 %v1519_v16  ;;  %v1706_v19 = vsel %vm1704_vm4, %v1703_v46, %v1691_v45 }
 0x93d   :  { %1526 = vrot.lane.b32.xlu0 %v2501_v49, %s2293_s25  ;;  %v1713_v49 = vld [vmem:[#allocation11 + $0x18] sm:$0xff] }
 0x93e   :  { %v2065_v33 = vpack.c.bf16 %v1713_v49, %v1712_v32 }
 0x941   :  { %1688 = vrot.lane.b32.xlu0 %v1268_v60, %s2294_s26 }
 0x9a7   :  { %v1518_v17 = vpop.xlane.xlu0 %1517 }
 0x9a8   :  { %2113 = vrcp.f32 %v1518_v17 }
 0x9b2   :  { %v2114_v24 = vpop.eup %2113 }
 0x9b3   :  { %v1523_v25 = vmul.f32 %v2114_v24, %v2110_v12 }
 0x9b4   :  { %v1521_v23 = vpop.xlane.xlu0 %1520 }
 0x9b5   :  { %2115 = vrcp.f32 %v1521_v23 }
 0x9b8   :  { %v1527_v26 = vpop.permute.xlu0 %1526 }
 0x9b9   :  { %2017 = vmatpush3.msra.mxu0 %v1527_v26 }
 0x9ba   :  { %2019 = vmatmul.mubr.msk.f32.vlgmr.msra.gmra.mrb[14].mxu0 %vm365_vm2, %v1523_v25  ;;  %2062 = vmatprep.subr.bf16.mxu0 %v2061_v31 }
 0x9bb   :  { %2064 = vmatpush3.bf16.msra.mxu0 %v2061_v31 }
 0x9bc   :  { %2066 = vmatprep.subr.bf16.mxu0 %v2065_v33  ;;  %v1689_v39 = vpop.permute.xlu0 %1688 }
 0x9bd   :  { %v1705_v42 = vsel %vm1704_vm4, %v1702_v41, %v1689_v39 }
 0x9bf   :  { %v2116_v27 = vpop.eup %2115  ;;  %2068 = vmatpush3.bf16.msra.mxu0 %v2065_v33 }
 0x9c0   :  { %v1525_v28 = vmul.f32 %v2116_v27, %v2112_v15 }
 0x9c2   :  { %2024 = vmatmul.mubr.msk.f32.vlgmr.msra.gmra.mrb[20].mxu1 %vm365_vm2, %v1525_v28 }
 0xa8d   :  { %v1598_v34 = vpop.f32.mrb[14].mxu0 }
 0xa8e   :  { %1696 = vrot.lane.b32.xlu0 %v1598_v34, %s2295_s28  ;;  %v2020_v35 = vpop.f32.mrb[15].mxu0 }
 0xa95   :  { %v1674_v36 = vpop.f32.mrb[20].mxu1 }
 0xa96   :  { %1698 = vrot.lane.b32.xlu1 %v1674_v36, %s2295_s28  ;;  %v2025_v37 = vpop.f32.mrb[21].mxu1 }
 0xb00   :  { %v1697_v43 = vpop.permute.xlu0 %1696 }
 0xb01   :  { %v1708_v44 = vsel %vm1707_vm3, %v1705_v42, %v1697_v43 }
 0xb02   :  { %2034 = vmatprep.mubr.msk.f32.mxu0 %vm119_vm0, %v1708_v44 }
 0xb08   :  { %v1699_v20 = vpop.permute.xlu1 %1698 }
 0xb09   :  { %v1709_v21 = vsel %vm1707_vm3, %v1706_v19, %v1699_v20 }
 0xb0a   :  { %2035 = vmatmul.mubr.msk.f32.vlgmr.msra.gmra.mrb[16].mxu0 %vm119_vm0, %v1709_v21 }
 0xbdd   :  { %v2036_v1 = vpop.f32.mrb[16].mxu0 }
 0xbde   :  { %v1799_v50 = vadd.f32 %v2036_v1, %v1854_v47  ;;  %v1793_v51 = vpop.f32.mrb[17].mxu0 }
 0xbdf   :  { %v1794_v52 = vadd.f32 %v1854_v47, %v1793_v51 }
 0xbe0   :  { %1803 = vst.msk [vmem:[#allocation13 + $0x8] sm:$0xff] %vm119_vm0, %v1799_v50 }
 0xbe1   :  { %1802 = vst.msk [vmem:[#allocation13] sm:$0xff] %vm119_vm0, %v1794_v52 }
 0xbe2   :  { %2260 = shalt.err (!%p2257_p10)
}
 0xbe3   :  { %s2261_s15 = scalar_lea.hbm %s2641_s7, 256 }
 0xbe4   :  { %p2262_p11 = scmp.ne.s32.totalorder %s2641_s7, %s2261_s15  ;;  %p2265_p12 = scmp.lt.u32.totalorder %s2261_s15, %s2641_s7 }
 0xbe6   :  { %p2267_p13 = pnand %p2265_p12, %p2262_p11 }
 0xbe8   :  { %2270 = shalt.err (!%p2267_p13)
}
 0xbe9   :  { %1815 = dma.vmem_to_hbm [thread:$0]  %s1810_s10, 256, %s2641_s7, [#allocation4], %s2283_s13, %s2283_s13, %s2284_s14  }
 0xbea   :  { %2279 = dma.done.wait [#allocation4], 256  }
 0xbeb   :  { %2280 = vsyncadd [#allocation4], 4294967040 }
 0xbec   :  { %1819 = vsyncpa [#allocation3], 1 }
 0xbed   :  { %1820 = vsyncpa [#allocation6], 1 }
 0xbee   :  { %1821 = vsyncpa [#allocation9], 1 }
 0xbef   :  { %1822 = vsyncpa [#allocation12], 1 }
 0xbf0   :  { %1823 = vsyncpa [#allocation4], 1 }

</bundles_post_ra>
